<compile_context>
chip_gen: v6e
topology: v6e:2x2x1
jax: 0.10.0
libtpu: 0.0.40
codegen_flags: <defaults>
</compile_context>

<pallas_src>
import functools

import jax
import jax.numpy as jnp
from jax.experimental import pallas as pl
from jax.experimental.pallas import tpu as pltpu

EPS = 1e-07
_LANES = 128
_SUBLANES = 8
# Use the simple (bsz, P) full-block path while the lane-padded VMEM footprint
# of the positives stays small (<= 128K padded f32 elements ~= 512 KiB).
_SMALL_PATH_MAX_PADDED_ELEMS = 128 * 1024
# Row-tile cap for the slab path: 2048 rows * 128 lanes * 4 B = 1 MiB/buffer
# (2 MiB double-buffered) -- fits scoped-VMEM defaults on v5e/v6e/v7x.
_MAX_TILE_ROWS = 2048


def _round_up(n, m):
    return ((n + m - 1) // m) * m


def _sum_log_d1(xp, shift):
    # log(p / (p + shift)) computed exactly like the reference (div then log).
    log_d1 = jnp.log(xp / (xp + shift))
    s = jnp.sum(log_d1, axis=1, keepdims=True)   # lane (XLU) reduce
    return jnp.sum(s, axis=0, keepdims=True)     # sublane reduce -> (1, 1)


def _small_kernel(xp_ref, o_ref, *, shift, bsz):
    # xp_ref: (bsz, P) positives, full-array block.
    xp = xp_ref[...].astype(jnp.float32)
    total = _sum_log_d1(xp, jnp.float32(shift))
    o_ref[...] = -total / jnp.float32(bsz)


def _tiled_kernel(slab_ref, o_ref, acc_ref, *, shift, bsz, n_pad):
    # slab_ref: (tile_r, 128) lane-dense slab tile (padded with 1.0).
    i = pl.program_id(0)

    @pl.when(i == 0)
    def _():
        acc_ref[...] = jnp.zeros_like(acc_ref)

    xp = slab_ref[...].astype(jnp.float32)
    acc_ref[...] += _sum_log_d1(xp, jnp.float32(shift))

    @pl.when(i == pl.num_programs(0) - 1)
    def _():
        # Each padded element (value 1.0) contributed exactly
        # log(1 / (1 + shift)); remove that analytically (no iota/mask work).
        one = jnp.float32(1.0)
        pad_term = jnp.log(one / (one + jnp.float32(shift)))
        valid = acc_ref[...] - jnp.float32(n_pad) * pad_term
        o_ref[...] = -valid / jnp.float32(bsz)


def contrast_loss(x, P, n_data, *, tile_rows=None):
    """x: [bsz, M] or [bsz, M, 1]; P, n_data: static ints."""
    if x.ndim == 3:                      # CRD layout: squeeze trailing singleton
        x = x[..., 0]
    bsz, M = x.shape
    n_negatives = M - P
    shift = float(n_negatives) / float(n_data) + EPS

    p_pos = x[:, 0:P]                    # negatives never leave HBM
    n_valid = bsz * P

    padded_elems = _round_up(bsz, _SUBLANES) * _round_up(P, _LANES)
    use_small = (padded_elems <= _SMALL_PATH_MAX_PADDED_ELEMS) and tile_rows is None

    if use_small:
        kernel = functools.partial(_small_kernel, shift=shift, bsz=bsz)
        cost = pl.CostEstimate(
            flops=6 * n_valid,
            transcendentals=n_valid,             # one log per positive
            bytes_accessed=n_valid * p_pos.dtype.itemsize + 4,
        )
        out = pl.pallas_call(
            kernel,
            out_shape=jax.ShapeDtypeStruct((1, 1), jnp.float32),
            grid_spec=pltpu.PrefetchScalarGridSpec(
                num_scalar_prefetch=0,
                grid=(1,),
                # Full-array block: legal even when bsz % 8 != 0, P % 128 != 0.
                in_specs=[pl.BlockSpec((bsz, P), lambda i: (0, 0))],
                out_specs=pl.BlockSpec((1, 1), lambda i: (0, 0)),
            ),
            compiler_params=pltpu.CompilerParams(
                dimension_semantics=("arbitrary",)),
            cost_estimate=cost,
        )(p_pos)
        return out[0, 0]

    # ---- Lane-dense slab path (large inputs) -------------------------------
    rows_needed = pl.cdiv(n_valid, _LANES)
    if tile_rows is not None:
        tile_r = max(_SUBLANES, _round_up(min(tile_rows, rows_needed), _SUBLANES))
    elif rows_needed <= _MAX_TILE_ROWS:
        tile_r = _round_up(rows_needed, _SUBLANES)
    else:
        tile_r = _MAX_TILE_ROWS
    rows = _round_up(rows_needed, tile_r)        # every tile is full
    padded_total = rows * _LANES
    n_pad = padded_total - n_valid

    flat = p_pos.reshape(n_valid)
    flat = jnp.pad(flat, (0, n_pad), constant_values=1.0)
    slab = flat.reshape(rows, _LANES)

    kernel = functools.partial(_tiled_kernel, shift=shift, bsz=bsz, n_pad=n_pad)
    cost = pl.CostEstimate(
        flops=6 * padded_total,
        transcendentals=padded_total,
        bytes_accessed=padded_total * slab.dtype.itemsize + 4,
    )
    out = pl.pallas_call(
        kernel,
        out_shape=jax.ShapeDtypeStruct((1, 1), jnp.float32),
        grid_spec=pltpu.PrefetchScalarGridSpec(
            num_scalar_prefetch=0,
            grid=(rows // tile_r,),
            in_specs=[pl.BlockSpec((tile_r, _LANES), lambda i: (i, 0))],
            out_specs=pl.BlockSpec((1, 1), lambda i: (0, 0)),
            scratch_shapes=[pltpu.VMEM((1, 1), jnp.float32)],
        ),
        compiler_params=pltpu.CompilerParams(
            dimension_semantics=("arbitrary",)),
        cost_estimate=cost,
    )(slab)
    return out[0, 0]
    # TODO(synk): a v7x dual-TensorCore split (leading 'parallel' axis of 2 with
    # per-core partials) is omitted; this loss is overhead-bound at CRD sizes.


if __name__ == "__main__":
    key = jax.random.PRNGKey(0)

    def _ref(x, P, n_data):
        if x.ndim == 3:
            x = x[..., 0]
        bsz, M = x.shape
        Pn = 1.0 / float(n_data)
        p_pos = x[:, 0:P].astype(jnp.float32)
        return -jnp.sum(jnp.log(p_pos / (p_pos + (M - P) * Pn + EPS))) / bsz

    k1, k2, k3 = jax.random.split(key, 3)

    # Case 1: classic CRD layout, 1 positive + 8 negatives, trailing singleton.
    bsz, P, K, n_data = 2, 1, 8, 128
    x1 = jax.nn.sigmoid(jax.random.normal(k1, (bsz, P + K, 1), dtype=jnp.float32))
    loss1 = jax.block_until_ready(contrast_loss(x1, P, n_data))
    ref1 = _ref(x1, P, n_data)
    assert jnp.allclose(loss1, ref1, rtol=1e-5, atol=1e-6), (loss1, ref1)

    # Case 2: multiple positives, 2-D input, small full-block path.
    bsz2, P2, K2, n_data2 = 4, 3, 16, 512
    x2 = jax.nn.sigmoid(jax.random.normal(k2, (bsz2, P2 + K2), dtype=jnp.float32))
    loss2 = jax.block_until_ready(contrast_loss(x2, P2, n_data2))
    ref2 = _ref(x2, P2, n_data2)
    assert jnp.allclose(loss2, ref2, rtol=1e-5, atol=1e-6), (loss2, ref2)

    # Case 3: larger batch -> lane-dense slab path; tile_rows=16 forces a
    # multi-tile grid so the accumulator + analytic pad correction are tested.
    bsz3, P3, K3, n_data3 = 2000, 3, 13, 4096
    x3 = jax.nn.sigmoid(jax.random.normal(k3, (bsz3, P3 + K3), dtype=jnp.float32))
    loss3 = jax.block_until_ready(contrast_loss(x3, P3, n_data3, tile_rows=16))
    ref3 = _ref(x3, P3, n_data3)
    assert jnp.allclose(loss3, ref3, rtol=1e-5, atol=1e-6), (loss3, ref3)

    print("KERNEL_OK")
</pallas_src>

<mosaic_0001>
module attributes {stable_mosaic.version = 11 : i64} {
  func.func @_small_kernel(%arg0: i32, %arg1: memref<2x1xf32, #tpu.memory_space<vmem>>, %arg2: memref<1x1xf32, #tpu.memory_space<vmem>>) attributes {dimension_semantics = [#tpu.dimension_semantics<arbitrary>], iteration_bounds = array<i64: 1>, scalar_prefetch = 0 : i64, scratch_operands = 0 : i64, tpu.core_type = #tpu.core_type<tc>, window_params = [{pipeline_mode = #tpu.pipeline_mode<synchronous>, transform_indices = @transform_0, window_bounds = array<i64: 2, 1>}, {pipeline_mode = #tpu.pipeline_mode<synchronous>, transform_indices = @transform_1, window_bounds = array<i64: 1, 1>}]} {
    %c0 = arith.constant 0 : index
    %c0_0 = arith.constant 0 : index
    %0 = vector.load %arg1[%c0, %c0_0] : memref<2x1xf32, #tpu.memory_space<vmem>>, vector<2x1xf32>
    %cst = arith.constant 6.250010e-02 : f32
    %1 = vector.broadcast %cst : f32 to vector<2x1xf32>
    %2 = arith.addf %0, %1 : vector<2x1xf32>
    %3 = arith.divf %0, %2 : vector<2x1xf32>
    %4 = math.log %3 : vector<2x1xf32>
    %cst_1 = arith.constant dense<0.000000e+00> : vector<2xf32>
    %5 = vector.multi_reduction <add>, %4, %cst_1 [1] : vector<2x1xf32> to vector<2xf32>
    %6 = vector.shape_cast %5 : vector<2xf32> to vector<2x1xf32>
    %cst_2 = arith.constant dense<0.000000e+00> : vector<1xf32>
    %7 = vector.multi_reduction <add>, %6, %cst_2 [0] : vector<2x1xf32> to vector<1xf32>
    %8 = vector.shape_cast %7 : vector<1xf32> to vector<1x1xf32>
    %cst_3 = arith.constant 0.000000e+00 : f32
    %9 = vector.broadcast %cst_3 : f32 to vector<1x1xf32>
    %10 = arith.subf %9, %8 : vector<1x1xf32>
    %cst_4 = arith.constant 2.000000e+00 : f32
    %11 = vector.broadcast %cst_4 : f32 to vector<1x1xf32>
    %12 = arith.divf %10, %11 : vector<1x1xf32>
    %c0_5 = arith.constant 0 : index
    %c0_6 = arith.constant 0 : index
    %13 = vector.load %arg2[%c0_5, %c0_6] : memref<1x1xf32, #tpu.memory_space<vmem>>, vector<1x1xf32>
    tpu.vector_store %arg2[%c0_5, %c0_6], %12 {strides = array<i32>} : memref<1x1xf32, #tpu.memory_space<vmem>>, vector<1x1xf32>,
    return
  }
  func.func @transform_0(%arg0: i32) -> (i32, i32) {
    %c0_i32 = arith.constant 0 : i32
    %c0_i32_0 = arith.constant 0 : i32
    %c0_i32_1 = arith.constant 0 : i32
    return %c0_i32, %c0_i32_0 : i32, i32
  }
  func.func @transform_1(%arg0: i32) -> (i32, i32) {
    %c0_i32 = arith.constant 0 : i32
    %c0_i32_0 = arith.constant 0 : i32
    %c0_i32_1 = arith.constant 0 : i32
    return %c0_i32, %c0_i32_0 : i32, i32
  }
}

</mosaic_0001>

<bundles_post_ra>
// kernel: tpu_custom_call.1
= control target key start
LH: loop header
LB: loop body
LE: loop exit
PB: predicated region body
PF: predicated region fallthrough
CT: control target
= control target key end

     0   :  { %s87_s0 = inlined_call_operand.vmem [shape: f32[2,1], index: 0, kind: input, shape index: {}]   ;;  %s88_s1 = inlined_call_operand.hbm [shape: f32[1,1], index: 1, kind: output, shape index: {}]  }
   0x1   :  { %v9_v0 = vld [vmem:[%s87_s0] sm:$0x3] }
   0x2   :  { %6 = vsyncpa [#allocation3], 0  ;;  %v10_v1 = vadd.f32 0.0625001, %v9_v0  ;;  %vm16_vm0 = vcmask 1024   ;;  %s70_s8 = smov [#allocation2]  }
   0x3   :  { %s35_s9 = sshll.u32 %s70_s8, 4  ;;  %vm27_vm1 = vcmask 0   ;;  %s36_s9 = int_to_ptr.vmem [resolvable:$true] %s35_s9 }
   0x4   :  { %44 = vrcp.f32 %v10_v1  ;;  %s48_s0 = scalar_lea.vmem %s36_s9, 16  ;;  %s52_s10 = scalar_lea.vmem %s36_s9, 32 }
   0x5   :  { %p49_p0 = scmp.ne.s32.totalorder %s36_s9, %s48_s0  ;;  %p53_p1 = scmp.lt.s32.totalorder %s36_s9, %s36_s9 }
   0x6   :  { %p54_p2 = scmp.lt.s32.totalorder %s52_s10, %s48_s0 }
   0x8   :  { %p55_p3 = por %p54_p2, %p53_p1 }
   0xa   :  { %p56_p4 = pnand %p55_p3, %p49_p0 }
  0x11   :  { %v45_v2 = vpop.eup %44 }
  0x12   :  { %v12_v3 = vmul.f32 %v45_v2, %v9_v0 }
  0x14   :  { %46 = vlog2.f32 %v12_v3 }
  0x21   :  { %v47_v4 = vpop.eup %46 }
  0x22   :  { %v14_v5 = vmul.f32 0.6931472, %v47_v4 }
  0x24   :  { %v17_v6 = vsel %vm16_vm0, %v14_v5, 0.0 }
  0x25   :  { %v18_v7 = vrot.slane %v17_v6, 4 }
  0x27   :  { %v19_v8 = vadd.f32 %v18_v7, %v17_v6 }
  0x29   :  { %v20_v9 = vrot.slane %v19_v8, 2 }
  0x2b   :  { %v21_v10 = vadd.f32 %v20_v9, %v19_v8 }
  0x2d   :  { %v22_v11 = vrot.slane %v21_v10, 1 }
  0x2f   :  { %v23_v12 = vadd.f32 %v22_v11, %v21_v10 }
  0x31   :  { %v24_v13 = vsub.f32 0.0, %v23_v12 }
  0x33   :  { %v26_v14 = vmul.f32 0.5, %v24_v13 }
  0x35   :  { %28 = vst.msk [vmem:[#allocation2] sm:$0x1] %vm27_vm1, %v26_v14 }
  0x36   :  { %59 = shalt.err (!%p56_p4)
}
  0x37   :  { %38 = dma.vmem_to_hbm [thread:$0]  %s36_s9, 16, %s88_s1, [#allocation3]  }
  0x38   :  { %68 = dma.done.wait [#allocation3], 16  }
  0x39   :  { %69 = vsyncadd [#allocation3], 4294967280 }
  0x3a   :  { %42 = vsyncpa [#allocation3], 1 }

</bundles_post_ra>
